<compile_context>
chip_gen: v6e
topology: v6e:2x2x1
jax: 0.10.0
libtpu: 0.0.40
codegen_flags: <defaults>
</compile_context>

<pallas_src>
import functools

import jax
import jax.numpy as jnp
from jax import lax
from jax.experimental import pallas as pl
from jax.experimental.pallas import tpu as pltpu

TEMPERATURE = 0.1
_NEG_BIG = -1e30   # "minus infinity" that gives exp()==0 exactly and is NaN-proof


def _instance_loss_kernel(zq_ref, zkt_ref, pos_ref, out_ref, m_ref, l_ref, *,
                          tq, tk, inv_temp, valid_cols):
    i = pl.program_id(0)           # row-tile index    ("parallel", megacore)
    j = pl.program_id(1)           # column-tile index ("arbitrary", online reduction)

    # ---- init per-row accumulators at the start of each column sweep -----------
    @pl.when(j == 0)
    def _():
        m_ref[...] = jnp.full((tq, 1), -jnp.inf, jnp.float32)
        l_ref[...] = jnp.zeros((tq, 1), jnp.float32)

    # Fold 1/temperature into the query tile (TQ*D muls) instead of scaling the
    # full (TQ,TK) similarity tile.
    zq = zq_ref[...] * jnp.float32(inv_temp)                              # (TQ, D)

    # ---- sim tile on the MXU: (TQ, D) @ (D, TK), f32 accumulate -----------------
    s = jnp.dot(zq, zkt_ref[...], preferred_element_type=jnp.float32)     # (TQ, TK)

    def _online_update(s_tile):
        m_prev = m_ref[...]
        m_new = jnp.maximum(m_prev, jnp.max(s_tile, axis=1, keepdims=True))
        l_ref[...] = (l_ref[...] * jnp.exp(m_prev - m_new)
                      + jnp.sum(jnp.exp(s_tile - m_new), axis=1, keepdims=True))
        m_ref[...] = m_new

    # ---- scalar-gated masking ---------------------------------------------------
    # Masking is needed only when the global diagonal crosses this block, or the
    # block contains padded columns (global col >= valid_cols).  Most tiles take
    # the unmasked path and never build the iota/compare/select.
    row0 = i * tq
    col0 = j * tk
    crosses_diag = jnp.logical_and(col0 < row0 + tq, row0 < col0 + tk)
    has_pad_cols = (col0 + tk) > valid_cols
    needs_mask = jnp.logical_or(crosses_diag, has_pad_cols)

    @pl.when(needs_mask)
    def _():
        # Global diagonal element of local row r sits at global column row0 + r.
        col_ids = lax.broadcasted_iota(jnp.int32, (1, tk), 1) + col0      # (1, TK)
        row_ids = lax.broadcasted_iota(jnp.int32, (tq, 1), 0) + row0      # (TQ, 1)
        dead = jnp.logical_or(col_ids == row_ids, col_ids >= valid_cols)  # (TQ, TK)
        _online_update(jnp.where(dead, jnp.float32(_NEG_BIG), s))

    @pl.when(jnp.logical_not(needs_mask))
    def _():
        _online_update(s)

    # ---- finalize on the last column tile ---------------------------------------
    @pl.when(j == pl.num_programs(1) - 1)
    def _():
        pos = pos_ref[...]                     # (TQ, 1), already scaled by 1/T
        m = m_ref[...]
        l = l_ref[...]
        lse_sim = m + jnp.log(l)               # logsumexp over the masked sim row
        # logits row = [pos | masked sim row] (positive appears twice, exactly as
        # in the PyTorch module).  First log_softmax denominator:
        m1 = jnp.maximum(m, pos)
        lse1 = m1 + jnp.log(l * jnp.exp(m - m1) + jnp.exp(pos - m1))
        ls_pos = pos - lse1
        # CrossEntropyLoss applies log_softmax a second time; its denominator is
        # reconstructible from per-row scalars only — no second pass over sim.
        lse2 = jnp.log(jnp.exp(ls_pos) + jnp.exp(lse_sim - lse1))
        # (TQ,1) column store happens once per row sweep (TQ*4 bytes); a lane-dense
        # (1,TQ) variant would need a sublane->lane relayout for negligible traffic,
        # so the column layout is kept deliberately.
        out_ref[...] = lse2 - ls_pos


def _round_up(x, m):
    return (x + m - 1) // m * m


def _pick_tile(total, target, align):
    """Largest multiple of `align` that is <= target and divides `total`; else full extent."""
    t = min(target, total)
    t -= t % align
    while t >= align:
        if total % t == 0:
            return t
        t -= align
    return total


def _vmem_limit_bytes():
    # Chip-aware scoped-VMEM limit: ~3/4 of physical, capped at 96 MiB.
    # v5e/v6e (128 MiB physical) -> 96 MiB; v7x (64 MiB physical) -> 48 MiB.
    try:
        cap = int(pltpu.get_tpu_info().vmem_capacity_bytes)
    except Exception:
        cap = 64 * 1024 * 1024
    if cap < 32 * 1024 * 1024:
        cap = 64 * 1024 * 1024
    return int(min(96 * 1024 * 1024, (cap * 3) // 4))


def instance_loss(z_i, z_j, temperature=TEMPERATURE):
    n, d = z_i.shape
    assert z_j.shape == (n, d)
    two_n = 2 * n
    inv_temp = 1.0 / float(temperature)

    z = jnp.concatenate([z_i, z_j], axis=0).astype(jnp.float32)           # (2N, D)
    z_partner = jnp.concatenate([z_j, z_i], axis=0).astype(jnp.float32)   # rows r <-> r±N
    # positives[r] = <z[r], z[partner(r)]>/T, precomputed in XLA (O(2N*D)) so the
    # kernel does not stream a (TQ, D) partner block per row tile.
    pos = jnp.sum(z * z_partner, axis=1, keepdims=True) * jnp.float32(inv_temp)

    # Explicit padding (instead of the full-extent fallback): keys to a multiple of
    # 128 (lane-aligned tk), queries to a small row quantum (little wasted exp work).
    p_cols = _round_up(two_n, 128)
    row_quant = 8 if two_n <= 64 else 64
    p_rows = _round_up(two_n, row_quant)

    zq = jnp.pad(z, ((0, p_rows - two_n), (0, 0)))           # (p_rows, D), zero rows
    z_t = jnp.pad(z.T, ((0, 0), (0, p_cols - two_n)))        # (D, p_cols), zero cols
    pos_p = jnp.pad(pos, ((0, p_rows - two_n), (0, 0)))      # (p_rows, 1)

    vmem_limit = _vmem_limit_bytes()

    # Row tile: at most half the (padded) rows so the "parallel" axis has >= 2 tiles
    # (both v7x TensorCores busy); large (<= 512) to cut z^T re-streaming on v5e.
    tq_target = max(8, min(512, p_rows // 2))
    tq = _pick_tile(p_rows, tq_target, 8)

    # Column tile: as large as the VMEM budget allows (fewer grid steps, fewer
    # lane-sparse m/l rescales); shrink the target if the estimate would not fit.
    def _tile_bytes(tk_):
        # double-buffered zq / z_t blocks + resident pos/out/scratch + ~4 live f32
        # copies of the (tq, tk) similarity tile inside the body.
        return 4 * (2 * tq * d + 2 * d * tk_ + 4 * tq) + 4 * 4 * tq * tk_

    tk_target = 1024
    while tk_target > 128 and _tile_bytes(tk_target) > vmem_limit // 2:
        tk_target //= 2
    tk = _pick_tile(p_cols, tk_target, 128)

    grid = (p_rows // tq, p_cols // tk)

    kernel = functools.partial(_instance_loss_kernel, tq=tq, tk=tk,
                               inv_temp=inv_temp, valid_cols=two_n)

    cost = pl.CostEstimate(
        # f32 matmul lowers to ~3 bf16 MXU passes.
        flops=3 * 2 * p_rows * p_cols * d,
        transcendentals=p_rows * p_cols + 8 * p_rows,
        bytes_accessed=4 * (p_rows * d + grid[0] * p_cols * d + 2 * p_rows),
    )

    per_row = pl.pallas_call(
        kernel,
        out_shape=jax.ShapeDtypeStruct((p_rows, 1), jnp.float32),
        grid_spec=pltpu.PrefetchScalarGridSpec(
            num_scalar_prefetch=0,
            grid=grid,
            in_specs=[
                pl.BlockSpec((tq, d), lambda i, j: (i, 0)),   # query rows (resident over j)
                pl.BlockSpec((d, tk), lambda i, j: (0, j)),   # pre-transposed key tile
                pl.BlockSpec((tq, 1), lambda i, j: (i, 0)),   # scaled positives
            ],
            out_specs=pl.BlockSpec((tq, 1), lambda i, j: (i, 0)),
            scratch_shapes=[
                pltpu.VMEM((tq, 1), jnp.float32),             # running max  m
                pltpu.VMEM((tq, 1), jnp.float32),             # running sum  l
            ],
        ),
        compiler_params=pltpu.CompilerParams(
            dimension_semantics=("parallel", "arbitrary"),
            vmem_limit_bytes=vmem_limit,
        ),
        cost_estimate=cost,
    )(zq, z_t, pos_p)

    # reduction='sum' over the real rows (padded rows are finite but excluded);
    # the module's final .mean() on a scalar is the identity.
    return jnp.sum(per_row[:two_n])


def instance_loss_ref(z_i, z_j, temperature=TEMPERATURE):
    """Pure-JAX reference matching the PyTorch forward (eager only)."""
    n = z_i.shape[0]
    two_n = 2 * n
    z = jnp.concatenate([z_i, z_j], axis=0).astype(jnp.float32)
    sim = jnp.matmul(z, z.T, precision=jax.lax.Precision.HIGHEST) / temperature
    sim = jnp.where(jnp.eye(two_n, dtype=bool), -jnp.inf, sim)
    pos = jnp.concatenate([jnp.diag(sim[:n, n:]), jnp.diag(sim[n:, :n])])
    mask = ~jnp.eye(two_n, dtype=bool)
    neg = sim[mask].reshape(two_n, -1)
    logits = jnp.concatenate([pos[:, None], neg], axis=1)
    ls = jax.nn.log_softmax(logits, axis=1)
    # CrossEntropyLoss(reduction='sum') with labels == 0 applied to ls
    loss = jnp.sum(-jax.nn.log_softmax(ls, axis=1)[:, 0])
    return loss


if __name__ == "__main__":
    key = jax.random.PRNGKey(0)
    k1, k2 = jax.random.split(key)
    N, D = 8, 32
    z_i = jax.random.normal(k1, (N, D), dtype=jnp.float32)
    z_j = jax.random.normal(k2, (N, D), dtype=jnp.float32)

    loss = instance_loss(z_i, z_j)
    jax.block_until_ready(loss)

    ref = instance_loss_ref(z_i, z_j)
    assert jnp.allclose(loss, ref, rtol=1e-4, atol=1e-3), (float(loss), float(ref))

    print("KERNEL_OK")
</pallas_src>

<mosaic_0001>
module attributes {stable_mosaic.version = 11 : i64} {
  func.func @_instance_loss_kernel(%arg0: i32, %arg1: i32, %arg2: memref<8x32xf32, #tpu.memory_space<vmem>>, %arg3: memref<32x128xf32, #tpu.memory_space<vmem>>, %arg4: memref<8x1xf32, #tpu.memory_space<vmem>>, %arg5: memref<8x1xf32, #tpu.memory_space<vmem>>, %arg6: memref<8x1xf32, #tpu.memory_space<vmem>>, %arg7: memref<8x1xf32, #tpu.memory_space<vmem>>) attributes {dimension_semantics = [#tpu.dimension_semantics<parallel>, #tpu.dimension_semantics<arbitrary>], iteration_bounds = array<i64: 2, 1>, scalar_prefetch = 0 : i64, scratch_operands = 2 : i64, tpu.core_type = #tpu.core_type<tc>, window_params = [{transform_indices = @transform_0, window_bounds = array<i64: 8, 32>}, {transform_indices = @transform_1, window_bounds = array<i64: 32, 128>}, {transform_indices = @transform_2, window_bounds = array<i64: 8, 1>}, {transform_indices = @transform_3, window_bounds = array<i64: 8, 1>}]} {
    %c0_i32 = arith.constant 0 : i32
    %0 = arith.cmpi eq, %arg1, %c0_i32 : i32
    %1 = arith.extui %0 : i1 to i32
    %c0_i32_0 = arith.constant 0 : i32
    %2 = arith.cmpi ne, %1, %c0_i32_0 : i32
    scf.if %2 {
      %cst_12 = arith.constant 0xFF800000 : f32
      %26 = vector.broadcast %cst_12 : f32 to vector<8x1xf32>
      %c0_13 = arith.constant 0 : index
      %c0_14 = arith.constant 0 : index
      %27 = vector.load %arg6[%c0_13, %c0_14] : memref<8x1xf32, #tpu.memory_space<vmem>>, vector<8x1xf32>
      tpu.vector_store %arg6[%c0_13, %c0_14], %26 {strides = array<i32>} : memref<8x1xf32, #tpu.memory_space<vmem>>, vector<8x1xf32>,
      %cst_15 = arith.constant 0.000000e+00 : f32
      %28 = vector.broadcast %cst_15 : f32 to vector<8x1xf32>
      %c0_16 = arith.constant 0 : index
      %c0_17 = arith.constant 0 : index
      %29 = vector.load %arg7[%c0_16, %c0_17] : memref<8x1xf32, #tpu.memory_space<vmem>>, vector<8x1xf32>
      tpu.vector_store %arg7[%c0_16, %c0_17], %28 {strides = array<i32>} : memref<8x1xf32, #tpu.memory_space<vmem>>, vector<8x1xf32>,
    } else {
    }
    %c0 = arith.constant 0 : index
    %c0_1 = arith.constant 0 : index
    %3 = vector.load %arg2[%c0, %c0_1] : memref<8x32xf32, #tpu.memory_space<vmem>>, vector<8x32xf32>
    %cst = arith.constant 1.000000e+01 : f32
    %4 = vector.broadcast %cst : f32 to vector<8x32xf32>
    %5 = arith.mulf %3, %4 : vector<8x32xf32>
    %c0_2 = arith.constant 0 : index
    %c0_3 = arith.constant 0 : index
    %6 = vector.load %arg3[%c0_2, %c0_3] : memref<32x128xf32, #tpu.memory_space<vmem>>, vector<32x128xf32>
    %cst_4 = arith.constant dense<0.000000e+00> : vector<8x128xf32>
    %7 = tpu.matmul %5, %6, %cst_4 {dimension_numbers = #tpu.dot_dimension_numbers<[1], [0], [0], [1], [0, 0, 1, 1], [], []>} : vector<8x32xf32>, vector<32x128xf32>, vector<8x128xf32> -> vector<8x128xf32>
    %c8_i32 = arith.constant 8 : i32
    %8 = arith.muli %arg0, %c8_i32 : i32
    %c128_i32 = arith.constant 128 : i32
    %9 = arith.muli %arg1, %c128_i32 : i32
    %c8_i32_5 = arith.constant 8 : i32
    %10 = arith.addi %8, %c8_i32_5 : i32
    %11 = arith.cmpi slt, %9, %10 : i32
    %c128_i32_6 = arith.constant 128 : i32
    %12 = arith.addi %9, %c128_i32_6 : i32
    %13 = arith.cmpi slt, %8, %12 : i32
    %14 = arith.andi %11, %13 : i1
    %c128_i32_7 = arith.constant 128 : i32
    %15 = arith.addi %9, %c128_i32_7 : i32
    %c16_i32 = arith.constant 16 : i32
    %16 = arith.cmpi sgt, %15, %c16_i32 : i32
    %17 = arith.ori %14, %16 : i1
    %18 = arith.extui %17 : i1 to i32
    %c0_i32_8 = arith.constant 0 : i32
    %19 = arith.cmpi ne, %18, %c0_i32_8 : i32
    scf.if %19 {
      %26 = tpu.iota {dimensions = array<i32: 1>} : vector<1x128xi32>
      %27 = vector.broadcast %9 : i32 to vector<1x128xi32>
      %28 = arith.addi %26, %27 : vector<1x128xi32>
      %29 = tpu.iota {dimensions = array<i32: 0>} : vector<8x1xi32>
      %30 = vector.broadcast %8 : i32 to vector<8x1xi32>
      %31 = arith.addi %29, %30 : vector<8x1xi32>
      %32 = vector.broadcast %28 : vector<1x128xi32> to vector<8x128xi32>
      %33 = vector.broadcast %31 : vector<8x1xi32> to vector<8x128xi32>
      %34 = arith.cmpi eq, %32, %33 : vector<8x128xi32>
      %c16_i32_12 = arith.constant 16 : i32
      %35 = vector.broadcast %c16_i32_12 : i32 to vector<1x128xi32>
      %36 = arith.cmpi sge, %28, %35 : vector<1x128xi32>
      %37 = vector.broadcast %36 : vector<1x128xi1> to vector<8x128xi1>
      %38 = arith.ori %34, %37 : vector<8x128xi1>
      %cst_13 = arith.constant -1.000000e+30 : f32
      %39 = vector.broadcast %cst_13 : f32 to vector<8x128xf32>
      %40 = arith.select %38, %39, %7 : vector<8x128xi1>, vector<8x128xf32>
      %c0_14 = arith.constant 0 : index
      %c0_15 = arith.constant 0 : index
      %41 = vector.load %arg6[%c0_14, %c0_15] : memref<8x1xf32, #tpu.memory_space<vmem>>, vector<8x1xf32>
      %cst_16 = arith.constant dense<0xFF800000> : vector<8xf32>
      %42 = vector.multi_reduction <maximumf>, %40, %cst_16 [1] : vector<8x128xf32> to vector<8xf32>
      %43 = vector.shape_cast %42 : vector<8xf32> to vector<8x1xf32>
      %44 = arith.maximumf %41, %43 : vector<8x1xf32>
      %c0_17 = arith.constant 0 : index
      %c0_18 = arith.constant 0 : index
      %45 = vector.load %arg7[%c0_17, %c0_18] : memref<8x1xf32, #tpu.memory_space<vmem>>, vector<8x1xf32>
      %46 = arith.subf %41, %44 : vector<8x1xf32>
      %47 = math.exp %46 : vector<8x1xf32>
      %48 = arith.mulf %45, %47 : vector<8x1xf32>
      %49 = vector.broadcast %44 : vector<8x1xf32> to vector<8x128xf32>
      %50 = arith.subf %40, %49 : vector<8x128xf32>
      %51 = math.exp %50 : vector<8x128xf32>
      %cst_19 = arith.constant dense<0.000000e+00> : vector<8xf32>
      %52 = vector.multi_reduction <add>, %51, %cst_19 [1] : vector<8x128xf32> to vector<8xf32>
      %53 = vector.shape_cast %52 : vector<8xf32> to vector<8x1xf32>
      %54 = arith.addf %48, %53 : vector<8x1xf32>
      %c0_20 = arith.constant 0 : index
      %c0_21 = arith.constant 0 : index
      %55 = vector.load %arg7[%c0_20, %c0_21] : memref<8x1xf32, #tpu.memory_space<vmem>>, vector<8x1xf32>
      tpu.vector_store %arg7[%c0_20, %c0_21], %54 {strides = array<i32>} : memref<8x1xf32, #tpu.memory_space<vmem>>, vector<8x1xf32>,
      %c0_22 = arith.constant 0 : index
      %c0_23 = arith.constant 0 : index
      %56 = vector.load %arg6[%c0_22, %c0_23] : memref<8x1xf32, #tpu.memory_space<vmem>>, vector<8x1xf32>
      tpu.vector_store %arg6[%c0_22, %c0_23], %44 {strides = array<i32>} : memref<8x1xf32, #tpu.memory_space<vmem>>, vector<8x1xf32>,
    } else {
    }
    %true = arith.constant true
    %20 = arith.xori %17, %true : i1
    %21 = arith.extui %20 : i1 to i32
    %c0_i32_9 = arith.constant 0 : i32
    %22 = arith.cmpi ne, %21, %c0_i32_9 : i32
    scf.if %22 {
      %c0_12 = arith.constant 0 : index
      %c0_13 = arith.constant 0 : index
      %26 = vector.load %arg6[%c0_12, %c0_13] : memref<8x1xf32, #tpu.memory_space<vmem>>, vector<8x1xf32>
      %cst_14 = arith.constant dense<0xFF800000> : vector<8xf32>
      %27 = vector.multi_reduction <maximumf>, %7, %cst_14 [1] : vector<8x128xf32> to vector<8xf32>
      %28 = vector.shape_cast %27 : vector<8xf32> to vector<8x1xf32>
      %29 = arith.maximumf %26, %28 : vector<8x1xf32>
      %c0_15 = arith.constant 0 : index
      %c0_16 = arith.constant 0 : index
      %30 = vector.load %arg7[%c0_15, %c0_16] : memref<8x1xf32, #tpu.memory_space<vmem>>, vector<8x1xf32>
      %31 = arith.subf %26, %29 : vector<8x1xf32>
      %32 = math.exp %31 : vector<8x1xf32>
      %33 = arith.mulf %30, %32 : vector<8x1xf32>
      %34 = vector.broadcast %29 : vector<8x1xf32> to vector<8x128xf32>
      %35 = arith.subf %7, %34 : vector<8x128xf32>
      %36 = math.exp %35 : vector<8x128xf32>
      %cst_17 = arith.constant dense<0.000000e+00> : vector<8xf32>
      %37 = vector.multi_reduction <add>, %36, %cst_17 [1] : vector<8x128xf32> to vector<8xf32>
      %38 = vector.shape_cast %37 : vector<8xf32> to vector<8x1xf32>
      %39 = arith.addf %33, %38 : vector<8x1xf32>
      %c0_18 = arith.constant 0 : index
      %c0_19 = arith.constant 0 : index
      %40 = vector.load %arg7[%c0_18, %c0_19] : memref<8x1xf32, #tpu.memory_space<vmem>>, vector<8x1xf32>
      tpu.vector_store %arg7[%c0_18, %c0_19], %39 {strides = array<i32>} : memref<8x1xf32, #tpu.memory_space<vmem>>, vector<8x1xf32>,
      %c0_20 = arith.constant 0 : index
      %c0_21 = arith.constant 0 : index
      %41 = vector.load %arg6[%c0_20, %c0_21] : memref<8x1xf32, #tpu.memory_space<vmem>>, vector<8x1xf32>
      tpu.vector_store %arg6[%c0_20, %c0_21], %29 {strides = array<i32>} : memref<8x1xf32, #tpu.memory_space<vmem>>, vector<8x1xf32>,
    } else {
    }
    %c0_i32_10 = arith.constant 0 : i32
    %23 = arith.cmpi eq, %arg1, %c0_i32_10 : i32
    %24 = arith.extui %23 : i1 to i32
    %c0_i32_11 = arith.constant 0 : i32
    %25 = arith.cmpi ne, %24, %c0_i32_11 : i32
    scf.if %25 {
      %c0_12 = arith.constant 0 : index
      %c0_13 = arith.constant 0 : index
      %26 = vector.load %arg4[%c0_12, %c0_13] : memref<8x1xf32, #tpu.memory_space<vmem>>, vector<8x1xf32>
      %c0_14 = arith.constant 0 : index
      %c0_15 = arith.constant 0 : index
      %27 = vector.load %arg6[%c0_14, %c0_15] : memref<8x1xf32, #tpu.memory_space<vmem>>, vector<8x1xf32>
      %c0_16 = arith.constant 0 : index
      %c0_17 = arith.constant 0 : index
      %28 = vector.load %arg7[%c0_16, %c0_17] : memref<8x1xf32, #tpu.memory_space<vmem>>, vector<8x1xf32>
      %29 = math.log %28 : vector<8x1xf32>
      %30 = arith.addf %27, %29 : vector<8x1xf32>
      %31 = arith.maximumf %27, %26 : vector<8x1xf32>
      %32 = arith.subf %27, %31 : vector<8x1xf32>
      %33 = math.exp %32 : vector<8x1xf32>
      %34 = arith.mulf %28, %33 : vector<8x1xf32>
      %35 = arith.subf %26, %31 : vector<8x1xf32>
      %36 = math.exp %35 : vector<8x1xf32>
      %37 = arith.addf %34, %36 : vector<8x1xf32>
      %38 = math.log %37 : vector<8x1xf32>
      %39 = arith.addf %31, %38 : vector<8x1xf32>
      %40 = arith.subf %26, %39 : vector<8x1xf32>
      %41 = math.exp %40 : vector<8x1xf32>
      %42 = arith.subf %30, %39 : vector<8x1xf32>
      %43 = math.exp %42 : vector<8x1xf32>
      %44 = arith.addf %41, %43 : vector<8x1xf32>
      %45 = math.log %44 : vector<8x1xf32>
      %46 = arith.subf %45, %40 : vector<8x1xf32>
      %c0_18 = arith.constant 0 : index
      %c0_19 = arith.constant 0 : index
      %47 = vector.load %arg5[%c0_18, %c0_19] : memref<8x1xf32, #tpu.memory_space<vmem>>, vector<8x1xf32>
      tpu.vector_store %arg5[%c0_18, %c0_19], %46 {strides = array<i32>} : memref<8x1xf32, #tpu.memory_space<vmem>>, vector<8x1xf32>,
    } else {
    }
    return
  }
  func.func @transform_0(%arg0: i32, %arg1: i32) -> (i32, i32) {
    %c0_i32 = arith.constant 0 : i32
    %c0_i32_0 = arith.constant 0 : i32
    return %arg0, %c0_i32 : i32, i32
  }
  func.func @transform_1(%arg0: i32, %arg1: i32) -> (i32, i32) {
    %c0_i32 = arith.constant 0 : i32
    %c0_i32_0 = arith.constant 0 : i32
    return %c0_i32, %arg1 : i32, i32
  }
  func.func @transform_2(%arg0: i32, %arg1: i32) -> (i32, i32) {
    %c0_i32 = arith.constant 0 : i32
    %c0_i32_0 = arith.constant 0 : i32
    return %arg0, %c0_i32 : i32, i32
  }
  func.func @transform_3(%arg0: i32, %arg1: i32) -> (i32, i32) {
    %c0_i32 = arith.constant 0 : i32
    %c0_i32_0 = arith.constant 0 : i32
    return %arg0, %c0_i32 : i32, i32
  }
}

</mosaic_0001>

<bundles_post_ra>
// kernel: tpu_custom_call.1
= control target key start
LH: loop header
LB: loop body
LE: loop exit
PB: predicated region body
PF: predicated region fallthrough
CT: control target
= control target key end

     0   :  { %8 = vsyncpa [#allocation5], 0  ;;  %s673_s12 = smov 0   ;;  %s675_s13 = smov 0   ;;  %s746_s0 = inlined_call_operand.vmem [shape: f32[16,32], index: 0, kind: input, shape index: {}]   ;;  %s747_s1 = inlined_call_operand.hbm [shape: f32[32,128], index: 1, kind: input, shape index: {}]   ;;  %s748_s2 = inlined_call_operand.vmem [shape: f32[16,1], index: 2, kind: input, shape index: {}]   ;;  %s749_s3 = inlined_call_operand.vmem [shape: f32[16,1], index: 3, kind: output, shape index: {}]  }
   0x1   :  { %s677_s14 = smov 0  }
   0x2 LB: > { %s501_s15 = sadd.s32 4294967295, %s644_s14   ;;  %s26_s16 = sadd.s32 1, %s640_s13  ;;  %s644_s14 = sphi %s677_s14, %s14_s14   ;;  %s640_s13 = sphi %s675_s13, %s753_s13   ;;  %s636_s12 = sphi %s673_s12, %s752_s12  }
   0x3   : > { %p28_p0 = scmp.ge.s32.totalorder %s26_s16, 2  ;;  %p503_p1 = scmp.ge.s32.totalorder %s644_s14, 1 }
   0x4   : > { %p135_p2 = scmp.lt.s32.totalorder %s644_s14, 3  ;;  %p698_p4 = scmp.eq.s32.totalorder %s501_s15, 0 }
   0x5   : > { %s755_s16 = smov (%p28_p0, %s26_s16), 0  ;;  %s646_s19 = smov [#allocation4]  }
   0x6   : > { %p694_p3 = pnand %p503_p1, %p135_p2  ;;  %s149_s20 = sshll.u32 %s646_s19, 4  ;;  %s150_s20 = int_to_ptr.vmem [resolvable:$true] %s149_s20 }
   0x7   : > { %s603_s21 = scalar_lea.vmem %s150_s20, 512  ;;  %p611_p11 = scmp.lt.s32.totalorder %s150_s20, %s150_s20 }
   0x8   : > { %p536_p5 = pneg %p694_p3  ;;  %p604_p8 = scmp.ne.s32.totalorder %s150_s20, %s603_s21 }
   0x9   : > { %p612_p12 = scmp.lt.s32.totalorder %s603_s21, %s603_s21 }
   0xa   : > { %p537_p6 = pnand %p698_p4, %p536_p5 }
   0xb   : > { %p613_p13 = por %p612_p12, %p611_p11 }
   0xc   : > { %p594_p7 = pneg %p537_p6 }
   0xe   : > { %p606_p9 = pnand %p604_p8, %p594_p7 }
  0x10   : > { %p607_p10 = pneg %p606_p9 }
  0x12   : > { %p614_p0 = pnand %p613_p13, %p607_p10 }
  0x14   : > { %617 = shalt.err (!%p614_p0)
}
  0x15   : > { %s647_s22 = smov 128   ;;  %s648_s23 = smov 8  }
  0x16   : > { %539 = dma.hbm_to_vmem [thread:$0]  (!%p537_p6), %s747_s1, 512, %s150_s20, [#allocation5], %s647_s22, %s647_s22, %s648_s23  }
  0x17   : > { %179 = sbr.rel (%p694_p3) target bundleno = 724 (0x2d4), region = 32 }
  0x1c   : > { %631 = dma.done.wait (%p698_p4), [#allocation5], 512  }
  0x1d   : > { %633 = vsyncadd (%p698_p4), [#allocation5], 4294966784  ;;  %p205_p1 = scmp.lt.s32.totalorder %s636_s12, 1  ;;  %v649_v0 = vmov 0.0   ;;  %vm650_vm0 = vmmov 0   ;;  %v229_v1 = vld [vmem:[#allocation4 + $0x18] sm:$0xff]  ;;  %v317_v8 = vlaneseq }
  0x1e   : > { %521 = vmatprep.subr.mxu0 %v649_v0  ;;  %529 = vmatprep.mubr.msk.f32.mxu0 %vm650_vm0, %v649_v0  ;;  %v228_v2 = vld [vmem:[#allocation4 + $0x10] sm:$0xff]  ;;  %v227_v4 = vld [vmem:[#allocation4 + $0x8] sm:$0xff]  ;;  %v226_v5 = vld [vmem:[#allocation4] sm:$0xff]  ;;  %vm230_vm1 = vcmask 261120   ;;  %vm221_vm2 = vcmask 7168   ;;  %v651_v7 = vmov -inf  }
  0x1f   : > { %s206_s26 = scalar_select %p205_p1, %s636_s12, 1  ;;  %522 = vmatpush3.msra.mxu0 %v229_v1  ;;  %222 = vst.msk [vmem:[#allocation2] sm:$0xff] %vm221_vm2, %v651_v7  ;;  %223 = vst.msk [vmem:[#allocation3] sm:$0xff] %vm221_vm2, %v649_v0  ;;  %v322_v9 = vshrl.u32 %v317_v8, 7  ;;  %v318_v11 = vand.u32 127, %v317_v8  ;;  %v652_v16 = vmov 0  }
  0x20   : > { %523 = vmatprep.subr.mxu0 %v649_v0  ;;  %s512_s4 = sshll.u32 %s636_s12, 3  ;;  %573 = vset.pattern.permute.xlu0 %v652_v16 }
  0x21   : > { %s717_s27 = sshll.u32 %s206_s26, 3  ;;  %524 = vmatpush3.msra.mxu0 %v228_v2  ;;  %v323_v10 = vstv %s512_s4  ;;  %vm326_vm4 = vcmp.ge.s32.totalorder %v318_v11, 16 }
  0x22   : > { %s208_s30 = scalar_lea.vmem %s746_s0, %s717_s27  ;;  %525 = vmatprep.subr.mxu0 %v649_v0  ;;  %v324_v12 = vadd.s32 %v323_v10, %v322_v9  ;;  %s212_s7 = scalar_lea.vmem %s748_s2, %s717_s27 }
  0x23   : > { %v224_v3 = vld [vmem:[%s208_s30] sm:$0xff]  ;;  %526 = vmatpush3.msra.mxu0 %v227_v4  ;;  %s216_s10 = scalar_lea.vmem %s749_s3, %s717_s27 }
  0x24   : > { %v225_v6 = vmul.f32 10.0, %v224_v3  ;;  %527 = vmatprep.subr.mxu0 %v649_v0  ;;  %vm325_vm3 = vcmp.eq.s32.totalorder %v318_v11, %v324_v12  ;;  %v383_v26 = vld [vmem:[%s212_s7] sm:$0xff] }
  0x25   : > { %528 = vmatpush3.msra.mxu0 %v226_v5  ;;  %vm329_vm5 = vmor %vm325_vm3, %vm326_vm4 }
  0x26   : > { %530 = vmatmul.mubr.msk.f32.vlgmr.msra.gmra.mxu0 %vm230_vm1, %v225_v6  ;;  %v331_v17 = vld [vmem:[#allocation2] sm:$0xff]  ;;  %v335_v34 = vld [vmem:[#allocation3] sm:$0xff] }
  0xe6   : > { %v300_v13 = vpop.f32.mrf.mxu0 }
  0xe7   : > { %v330_v14 = vsel %vm329_vm5, -1e+30, %v300_v13 }
  0xe8   : > { %332 = vmax.xlane.f32.xlu0 %v330_v14  ;;  %v531_v15 = vpop.f32.mrf.mxu0 }
 0x171   : > { %v333_v18 = vpop.xlane.xlu0 %332 }
 0x172   : > { %v334_v19 = vmax.f32 %v331_v17, %v333_v18 }
 0x174   : > { %v336_v20 = vsub.f32 %v331_v17, %v334_v19  ;;  %353 = vst.msk [vmem:[#allocation2] sm:$0xff] %vm221_vm2, %v334_v19  ;;  %342 = vperm.xlu0 %573, %v334_v19  }
 0x176   : > { %v337_v25 = vmul.f32 1.442695, %v336_v20 }
 0x17b   : > { %v384_v27 = vld [vmem:[#allocation2] sm:$0xff] }
 0x17c   : > { %v389_v28 = vmax.f32 %v384_v27, %v383_v26 }
 0x17e   : > { %v390_v29 = vsub.f32 %v384_v27, %v389_v28  ;;  %v394_v30 = vsub.f32 %v383_v26, %v389_v28 }
 0x180   : > { %v391_v31 = vmul.f32 1.442695, %v390_v29  ;;  %v395_v32 = vmul.f32 1.442695, %v394_v30 }
 0x1ef   : > { %v343_v21 = vpop.permute.xlu0 %342 }
 0x1f0   : > { %v345_v22 = vsub.f32 %v330_v14, %v343_v21 }
 0x1f2   : > { %v346_v23 = vmul.f32 1.442695, %v345_v22 }
 0x1f4   : > { %574 = vpow2.f32 %v346_v23 }
 0x1f5   : > { %576 = vpow2.f32 %v337_v25 }
 0x1f6   : > { %578 = vpow2.f32 %v391_v31 }
 0x1f7   : > { %580 = vpow2.f32 %v395_v32 }
 0x201   : > { %v575_v24 = vpop.eup %574 }
 0x202   : > { %348 = vadd.xlane.f32.xlu1 %v575_v24  ;;  %v577_v33 = vpop.eup %576 }
 0x203   : > { %v339_v35 = vmul.f32 %v577_v33, %v335_v34  ;;  %v579_v38 = vpop.eup %578 }
 0x204   : > { %v581_v41 = vpop.eup %580 }
 0x28b   : > { %v349_v36 = vpop.xlane.xlu1 %348 }
 0x28c   : > { %v350_v37 = vadd.f32 %v349_v36, %v339_v35 }
 0x28e   : > { %352 = vst.msk [vmem:[#allocation3] sm:$0xff] %vm221_vm2, %v350_v37 }
 0x295   : > { %v385_v39 = vld [vmem:[#allocation3] sm:$0xff] }
 0x296   : > { %582 = vlog2.f32 %v385_v39  ;;  %v393_v40 = vmul.f32 %v579_v38, %v385_v39 }
 0x298   : > { %v397_v42 = vadd.f32 %v581_v41, %v393_v40 }
 0x29a   : > { %584 = vlog2.f32 %v397_v42 }
 0x2a3   : > { %v583_v43 = vpop.eup %582 }
 0x2a4   : > { %v387_v44 = vmul.f32 0.6931472, %v583_v43 }
 0x2a6   : > { %v388_v47 = vadd.f32 %v387_v44, %v384_v27 }
 0x2a7   : > { %v585_v45 = vpop.eup %584 }
 0x2a8   : > { %v399_v46 = vmul.f32 0.6931472, %v585_v45 }
 0x2aa   : > { %v400_v48 = vadd.f32 %v399_v46, %v389_v28 }
 0x2ac   : > { %v401_v49 = vsub.f32 %v383_v26, %v400_v48  ;;  %v404_v50 = vsub.f32 %v388_v47, %v400_v48 }
 0x2ae   : > { %v402_v51 = vmul.f32 1.442695, %v401_v49  ;;  %v405_v52 = vmul.f32 1.442695, %v404_v50 }
 0x2b0   : > { %586 = vpow2.f32 %v402_v51 }
 0x2b1   : > { %588 = vpow2.f32 %v405_v52 }
 0x2bd   : > { %v587_v53 = vpop.eup %586 }
 0x2be   : > { %v589_v54 = vpop.eup %588 }
 0x2bf   : > { %v407_v55 = vadd.f32 %v589_v54, %v587_v53 }
 0x2c1   : > { %590 = vlog2.f32 %v407_v55 }
 0x2ce   : > { %v591_v56 = vpop.eup %590 }
 0x2cf   : > { %v409_v57 = vmul.f32 0.6931472, %v591_v56 }
 0x2d1   : > { %v410_v58 = vsub.f32 %v409_v57, %v401_v49 }
 0x2d3   : > { %412 = vst.msk [vmem:[%s216_s10] sm:$0xff] %vm221_vm2, %v410_v58 }
 0x2d4 PF: > { %s14_s14 = sadd.s32 1, %s644_s14   ;;  %s752_s12 = smov %s640_s13 }
 0x2d5   : > { %p11_p2 = scmp.ge.s32.totalorder %s14_s14, 4   ;;  %s753_s13 = smov %s755_s16 }
 0x2d7   :  { %13 = sbr.rel (!%p11_p2) target bundleno = 2 (0x2), region = 87 }
 0x2dc   :  { %432 = vsyncpa [#allocation5], 1 }
 0x2dd   :  { %434 = vsyncpa [#allocation5 + $0x1], 1 }

</bundles_post_ra>
